<compile_context>
chip_gen: v5e
topology: v5e:2x2
jax: 0.10.0
libtpu: 0.0.40
codegen_flags: <defaults>
</compile_context>

<pallas_src>
import functools

import jax
import jax.numpy as jnp
from jax import lax
from jax.experimental import pallas as pl
from jax.experimental.pallas import tpu as pltpu


_LANE = 128
_SUBLANE = 8
# Per-input block budget. 2 inputs x 2 pipeline buffers x 4 MiB = 16 MiB of
# VMEM, which fits comfortably inside the scoped-VMEM budget on every
# generation (v5e/v6e: 128 MiB physical, v7x: 64 MiB physical / 32 MiB scoped)
# while being large enough (>~2 MiB) to sit near the HBM roofline.
_BLOCK_BYTES_TARGET = 4 * 1024 * 1024
_VMEM_LIMIT_BYTES = 32 * 1024 * 1024


def _reduction_kernel(x_ref, y_ref, *o_refs, modes):
    """Accumulate per-column partial sums of (x-y)^2 / |x-y| into (8, W) blocks."""
    j = pl.program_id(1)  # reduction (row-tile) axis

    @pl.when(j == 0)
    def _():
        for o_ref in o_refs:
            o_ref[...] = jnp.zeros_like(o_ref)

    d = x_ref[...].astype(jnp.float32) - y_ref[...].astype(jnp.float32)
    tm, w = d.shape  # static block shape

    for mode, o_ref in zip(modes, o_refs):
        v = d * d if mode == "mse" else jnp.abs(d)
        if tm % _SUBLANE == 0:
            # Fold whole (8, W) vreg-row slabs on top of each other: pure VPU
            # elementwise adds every grid step, no XLU reduce on the critical
            # path. The one cross-lane/sublane reduce happens in the wrapper.
            o_ref[...] += jnp.sum(v.reshape(tm // _SUBLANE, _SUBLANE, w), axis=0)
        else:
            # Ragged path: only reached for tiny single-block inputs whose H is
            # not a multiple of 8. One sublane reduce, deposited into row 0.
            col = jnp.sum(v, axis=0, keepdims=True)  # (1, W)
            rows = lax.broadcasted_iota(jnp.int32, (_SUBLANE, w), 0)
            o_ref[...] += jnp.where(
                rows == 0, jnp.broadcast_to(col, (_SUBLANE, w)), jnp.float32(0.0)
            )


def _choose_tiling(h, w, itemsize):
    """Pick (tm, padded_h) with tm | padded_h, tm a multiple of 8 (or tm == h)."""
    row_bytes = w * itemsize

    # Tiny inputs (or very short images): a single block covering the whole
    # array — block shape equals the full array dims, so no (8,128) constraint
    # and no per-step pipeline overhead.
    if h <= _SUBLANE or h * row_bytes <= _BLOCK_BYTES_TARGET:
        # TODO(synk): pathological ultra-wide short images (h<8, W in the
        # millions) would also need column tiling; not handled here.
        return h, h

    tm_target = max(
        _SUBLANE, (_BLOCK_BYTES_TARGET // max(row_bytes, 1)) // _SUBLANE * _SUBLANE
    )
    tm_target = min(tm_target, h - h % _SUBLANE)

    if h % _SUBLANE == 0:
        # Prefer an exact multiple-of-8 divisor of H near the target tile
        # (avoids any padding copy).
        tm = tm_target
        while tm >= _SUBLANE and h % tm != 0:
            tm -= _SUBLANE
        if tm >= _SUBLANE and tm * row_bytes >= 512 * 1024:
            return tm, h

    # Fallback: zero-pad the row dimension up to a multiple of the target tile.
    # Zero rows contribute nothing to either loss sum, so results are exact.
    tm = tm_target
    padded_h = pl.cdiv(h, tm) * tm
    return tm, padded_h


def _pallas_sum_losses(out_amp, target_amp, modes):
    """Return tuple of mean losses (one per mode in `modes`) in a single pass."""
    assert out_amp.shape == target_amp.shape, "shape mismatch"
    assert out_amp.ndim == 2, "expected 2-D amplitude images"
    h, w = out_amp.shape
    itemsize = jnp.dtype(out_amp.dtype).itemsize

    tm, padded_h = _choose_tiling(h, w, itemsize)
    if padded_h != h:
        pad = padded_h - h
        out_amp = jnp.pad(out_amp, ((0, pad), (0, 0)))
        target_amp = jnp.pad(target_amp, ((0, pad), (0, 0)))

    n_blocks = padded_h // tm
    # Split the row stream across the two TensorCores on v7x via a leading
    # "parallel" grid axis (serialized and essentially free on 1-TC v5e/v6e).
    num_splits = 2 if (n_blocks % 2 == 0 and n_blocks >= 4) else 1
    blocks_per_split = n_blocks // num_splits

    kernel = functools.partial(_reduction_kernel, modes=tuple(modes))

    in_spec = pl.BlockSpec(
        (tm, w), lambda i, j, bps=blocks_per_split: (i * bps + j, 0)
    )
    out_spec = pl.BlockSpec((_SUBLANE, w), lambda i, j: (i, 0))
    out_shapes = tuple(
        jax.ShapeDtypeStruct((num_splits * _SUBLANE, w), jnp.float32) for _ in modes
    )

    flops = 3 * padded_h * w * len(modes)
    bytes_accessed = (
        2 * padded_h * w * itemsize + len(modes) * num_splits * _SUBLANE * w * 4
    )

    partials = pl.pallas_call(
        kernel,
        out_shape=out_shapes,
        grid_spec=pltpu.PrefetchScalarGridSpec(
            num_scalar_prefetch=0,
            grid=(num_splits, blocks_per_split),
            in_specs=[in_spec, in_spec],
            out_specs=tuple(out_spec for _ in modes),
        ),
        compiler_params=pltpu.CompilerParams(
            dimension_semantics=("parallel", "arbitrary"),
            vmem_limit_bytes=_VMEM_LIMIT_BYTES,
        ),
        cost_estimate=pl.CostEstimate(
            flops=flops, transcendentals=0, bytes_accessed=bytes_accessed
        ),
    )(out_amp, target_amp)

    inv_n = jnp.float32(1.0 / float(h * w))
    # One-time cross-lane/sublane reduce of the tiny (num_splits*8, W) partials.
    return tuple(jnp.sum(p) * inv_n for p in partials)


def fused_mse_mae(out_amp, target_amp):
    """Compute both MSE and MAE in one pass (one HBM read of the inputs)."""
    return _pallas_sum_losses(out_amp, target_amp, ("mse", "mae"))


class LossFuncs:
    """JAX/Pallas port of optimizeMethods.gradient_decent.lossFuncs.

    Only the MSE / MAE branches (nn.MSELoss / nn.L1Loss, mean reduction) are
    implemented as a TPU Pallas reduction kernel; these branches have no
    learnable parameters.
    """

    def __init__(self, loss_name, device=None):  # `device` kept for API parity
        if loss_name is None:
            loss_name = "MSE"
        if loss_name not in ("MSE", "MAE"):
            # TODO(synk): perceptual IQA/PIQ losses not translated to Pallas.
            raise ValueError(f"Loss '{loss_name}' not supported in Pallas port")
        self.loss_name = loss_name

    def __call__(self, out_amp, target_amp):
        mode = "mse" if self.loss_name == "MSE" else "mae"
        (loss,) = _pallas_sum_losses(out_amp, target_amp, (mode,))
        return loss


if __name__ == "__main__":
    key = jax.random.PRNGKey(0)
    k1, k2, k3, k4 = jax.random.split(key, 4)

    # Small 2-D amplitude images, consistent with the module's MSE/MAE path.
    H, W = 64, 128
    out_amp = jax.random.uniform(k1, (H, W), dtype=jnp.float32)
    target_amp = jax.random.uniform(k2, (H, W), dtype=jnp.float32)

    mse_loss = LossFuncs("MSE")(out_amp, target_amp)
    mae_loss = LossFuncs("MAE")(out_amp, target_amp)
    f_mse, f_mae = fused_mse_mae(out_amp, target_amp)
    jax.block_until_ready((mse_loss, mae_loss, f_mse, f_mae))

    ref_mse = jnp.mean((out_amp - target_amp) ** 2)
    ref_mae = jnp.mean(jnp.abs(out_amp - target_amp))
    assert jnp.allclose(mse_loss, ref_mse, rtol=1e-5, atol=1e-6)
    assert jnp.allclose(mae_loss, ref_mae, rtol=1e-5, atol=1e-6)
    assert jnp.allclose(f_mse, ref_mse, rtol=1e-5, atol=1e-6)
    assert jnp.allclose(f_mae, ref_mae, rtol=1e-5, atol=1e-6)

    # Non-multiple-of-8 height exercises the single-block ragged fallback.
    H2, W2 = 100, 256
    a = jax.random.uniform(k3, (H2, W2), dtype=jnp.float32)
    b = jax.random.uniform(k4, (H2, W2), dtype=jnp.float32)
    mse2 = LossFuncs("MSE")(a, b)
    mae2 = LossFuncs("MAE")(a, b)
    jax.block_until_ready((mse2, mae2))
    assert jnp.allclose(mse2, jnp.mean((a - b) ** 2), rtol=1e-5, atol=1e-6)
    assert jnp.allclose(mae2, jnp.mean(jnp.abs(a - b)), rtol=1e-5, atol=1e-6)

    print("KERNEL_OK")
</pallas_src>

<mosaic_0001>
module attributes {stable_mosaic.version = 11 : i64} {
  func.func @_reduction_kernel(%arg0: i32, %arg1: i32, %arg2: memref<64x128xf32, #tpu.memory_space<vmem>>, %arg3: memref<64x128xf32, #tpu.memory_space<vmem>>, %arg4: memref<8x128xf32, #tpu.memory_space<vmem>>) attributes {dimension_semantics = [#tpu.dimension_semantics<parallel>, #tpu.dimension_semantics<arbitrary>], iteration_bounds = array<i64: 1, 1>, scalar_prefetch = 0 : i64, scratch_operands = 0 : i64, tpu.core_type = #tpu.core_type<tc>, window_params = [{transform_indices = @transform_0, window_bounds = array<i64: 64, 128>}, {transform_indices = @transform_1, window_bounds = array<i64: 64, 128>}, {transform_indices = @transform_2, window_bounds = array<i64: 8, 128>}]} {
    %c0_i32 = arith.constant 0 : i32
    %0 = arith.cmpi eq, %arg1, %c0_i32 : i32
    %1 = arith.extui %0 : i1 to i32
    %c0_i32_0 = arith.constant 0 : i32
    %2 = arith.cmpi ne, %1, %c0_i32_0 : i32
    scf.if %2 {
      %cst_8 = arith.constant 0.000000e+00 : f32
      %12 = vector.broadcast %cst_8 : f32 to vector<8x128xf32>
      %c0_9 = arith.constant 0 : index
      %c0_10 = arith.constant 0 : index
      %13 = vector.load %arg4[%c0_9, %c0_10] : memref<8x128xf32, #tpu.memory_space<vmem>>, vector<8x128xf32>
      tpu.vector_store %arg4[%c0_9, %c0_10], %12 {strides = array<i32>} : memref<8x128xf32, #tpu.memory_space<vmem>>, vector<8x128xf32>,
    } else {
    }
    %c0 = arith.constant 0 : index
    %c0_1 = arith.constant 0 : index
    %3 = vector.load %arg2[%c0, %c0_1] : memref<64x128xf32, #tpu.memory_space<vmem>>, vector<64x128xf32>
    %c0_2 = arith.constant 0 : index
    %c0_3 = arith.constant 0 : index
    %4 = vector.load %arg3[%c0_2, %c0_3] : memref<64x128xf32, #tpu.memory_space<vmem>>, vector<64x128xf32>
    %5 = arith.subf %3, %4 : vector<64x128xf32>
    %6 = arith.mulf %5, %5 : vector<64x128xf32>
    %c0_4 = arith.constant 0 : index
    %c0_5 = arith.constant 0 : index
    %7 = vector.load %arg4[%c0_4, %c0_5] : memref<8x128xf32, #tpu.memory_space<vmem>>, vector<8x128xf32>
    %8 = vector.shape_cast %6 : vector<64x128xf32> to vector<8x8x128xf32>
    %cst = arith.constant dense<0.000000e+00> : vector<8x128xf32>
    %9 = vector.multi_reduction <add>, %8, %cst [0] : vector<8x8x128xf32> to vector<8x128xf32>
    %10 = arith.addf %7, %9 : vector<8x128xf32>
    %c0_6 = arith.constant 0 : index
    %c0_7 = arith.constant 0 : index
    %11 = vector.load %arg4[%c0_6, %c0_7] : memref<8x128xf32, #tpu.memory_space<vmem>>, vector<8x128xf32>
    tpu.vector_store %arg4[%c0_6, %c0_7], %10 {strides = array<i32>} : memref<8x128xf32, #tpu.memory_space<vmem>>, vector<8x128xf32>,
    return
  }
  func.func @transform_0(%arg0: i32, %arg1: i32) -> (i32, i32) {
    %c1_i32 = arith.constant 1 : i32
    %0 = arith.muli %arg0, %c1_i32 : i32
    %1 = arith.addi %0, %arg1 : i32
    %c0_i32 = arith.constant 0 : i32
    %c0_i32_0 = arith.constant 0 : i32
    return %1, %c0_i32 : i32, i32
  }
  func.func @transform_1(%arg0: i32, %arg1: i32) -> (i32, i32) {
    %c1_i32 = arith.constant 1 : i32
    %0 = arith.muli %arg0, %c1_i32 : i32
    %1 = arith.addi %0, %arg1 : i32
    %c0_i32 = arith.constant 0 : i32
    %c0_i32_0 = arith.constant 0 : i32
    return %1, %c0_i32 : i32, i32
  }
  func.func @transform_2(%arg0: i32, %arg1: i32) -> (i32, i32) {
    %c0_i32 = arith.constant 0 : i32
    %c0_i32_0 = arith.constant 0 : i32
    return %arg0, %c0_i32 : i32, i32
  }
}

</mosaic_0001>

<bundles_post_ra>
// kernel: tpu_custom_call.1
= control target key start
LH: loop header
LB: loop body
LE: loop exit
PB: predicated region body
PF: predicated region fallthrough
CT: control target
= control target key end

     0   :  { %7 = vsyncpa [#allocation3], 0  ;;  %s234_s0 = inlined_call_operand.hbm [shape: f32[64,128], index: 0, kind: input, shape index: {}]   ;;  %s235_s1 = inlined_call_operand.hbm [shape: f32[64,128], index: 1, kind: input, shape index: {}]   ;;  %s236_s2 = inlined_call_operand.hbm [shape: f32[8,128], index: 2, kind: output, shape index: {}]  }
   0x1   :  { %8 = vsyncpa [#allocation6], 0 }
   0x2   :  { %9 = vsyncpa [#allocation4], 0  ;;  %s18_s11 = sshll.u32 %s234_s0, 4  ;;  %s205_s12 = smov [#allocation2]   ;;  %s19_s11 = int_to_ptr.hbm [resolvable:$true] %s18_s11 }
   0x3   :  { %s20_s13 = sshll.u32 %s205_s12, 4  ;;  %s35_s16 = sshll.u32 %s235_s1, 4  ;;  %s21_s13 = int_to_ptr.vmem [resolvable:$true] %s20_s13  ;;  %s36_s16 = int_to_ptr.hbm [resolvable:$true] %s35_s16 }
   0x4   :  { %s206_s17 = smov 128   ;;  %s207_s18 = smov 8  }
   0x5   :  { %26 = dma.hbm_to_vmem [thread:$0]  %s19_s11, 1024, %s21_s13, [#allocation3], %s206_s17, %s206_s17, %s207_s18  }
   0x6   :  { %s208_s19 = smov [#allocation5]  }
   0x7   :  { %s37_s20 = sshll.u32 %s208_s19, 4  ;;  %s38_s20 = int_to_ptr.vmem [resolvable:$true] %s37_s20 }
   0x8   :  { %43 = dma.hbm_to_vmem [thread:$0]  %s36_s16, 1024, %s38_s20, [#allocation6], %s206_s17, %s206_s17, %s207_s18  }
   0x9   :  { %199 = dma.done.wait [#allocation3], 1024  }
   0xa   :  { %200 = vsyncadd [#allocation3], 4294966272 }
   0xb   :  { %201 = dma.done.wait [#allocation6], 1024  }
   0xc   :  { %202 = vsyncadd [#allocation6], 4294966272  ;;  %v61_v0 = vld [vmem:[#allocation2] sm:$0xff]  ;;  %v62_v1 = vld [vmem:[#allocation2 + $0x8] sm:$0xff]  ;;  %s209_s0 = smov [#allocation7]   ;;  %s110_s23 = sshll.u32 %s236_s2, 4  ;;  %s111_s23 = int_to_ptr.hbm [resolvable:$true] %s110_s23 }
   0xd   :  { %v63_v2 = vld [vmem:[#allocation2 + $0x10] sm:$0xff]  ;;  %v64_v3 = vld [vmem:[#allocation2 + $0x18] sm:$0xff]  ;;  %v65_v4 = vld [vmem:[#allocation2 + $0x20] sm:$0xff]  ;;  %s108_s1 = sshll.u32 %s209_s0, 4  ;;  %s109_s1 = int_to_ptr.vmem [resolvable:$true] %s108_s1 }
   0xe   :  { %v69_v5 = vld [vmem:[#allocation5] sm:$0xff]  ;;  %v70_v6 = vld [vmem:[#allocation5 + $0x8] sm:$0xff]  ;;  %v71_v7 = vld [vmem:[#allocation5 + $0x10] sm:$0xff] }
   0xf   :  { %v72_v8 = vld [vmem:[#allocation5 + $0x18] sm:$0xff]  ;;  %v77_v9 = vsub.f32 %v61_v0, %v69_v5  ;;  %v73_v10 = vld [vmem:[#allocation5 + $0x20] sm:$0xff]  ;;  %v78_v11 = vsub.f32 %v62_v1, %v70_v6  ;;  %v79_v12 = vsub.f32 %v63_v2, %v71_v7  ;;  %v66_v14 = vld [vmem:[#allocation2 + $0x28] sm:$0xff] }
  0x10   :  { %v80_v13 = vsub.f32 %v64_v3, %v72_v8  ;;  %v74_v15 = vld [vmem:[#allocation5 + $0x28] sm:$0xff]  ;;  %v81_v17 = vsub.f32 %v65_v4, %v73_v10  ;;  %v67_v20 = vld [vmem:[#allocation2 + $0x30] sm:$0xff]  ;;  %v68_v25 = vld [vmem:[#allocation2 + $0x38] sm:$0xff] }
  0x11   :  { %v85_v16 = vmul.f32 %v77_v9, %v77_v9  ;;  %v86_v18 = vmul.f32 %v78_v11, %v78_v11  ;;  %v87_v19 = vmul.f32 %v79_v12, %v79_v12  ;;  %v75_v21 = vld [vmem:[#allocation5 + $0x30] sm:$0xff]  ;;  %v82_v22 = vsub.f32 %v66_v14, %v74_v15  ;;  %v76_v26 = vld [vmem:[#allocation5 + $0x38] sm:$0xff] }
  0x12   :  { %v88_v23 = vmul.f32 %v80_v13, %v80_v13  ;;  %v83_v27 = vsub.f32 %v67_v20, %v75_v21  ;;  %v89_v28 = vmul.f32 %v81_v17, %v81_v17  ;;  %v84_v30 = vsub.f32 %v68_v25, %v76_v26 }
  0x13   :  { %v94_v24 = vadd.f32 %v86_v18, %v85_v16  ;;  %v90_v31 = vmul.f32 %v82_v22, %v82_v22 }
  0x14   :  { %v91_v33 = vmul.f32 %v83_v27, %v83_v27  ;;  %v92_v35 = vmul.f32 %v84_v30, %v84_v30 }
  0x15   :  { %v95_v29 = vadd.f32 %v94_v24, %v87_v19 }
  0x17   :  { %v96_v32 = vadd.f32 %v95_v29, %v88_v23 }
  0x19   :  { %v97_v34 = vadd.f32 %v96_v32, %v89_v28 }
  0x1b   :  { %v98_v36 = vadd.f32 %v97_v34, %v90_v31 }
  0x1d   :  { %v99_v37 = vadd.f32 %v98_v36, %v91_v33 }
  0x1f   :  { %v100_v38 = vadd.f32 %v99_v37, %v92_v35 }
  0x21   :  { %102 = vst [vmem:[#allocation7] sm:$0xff] %v100_v38 }
  0x22   :  { %113 = dma.vmem_to_hbm [thread:$0]  %s109_s1, 128, %s111_s23, [#allocation4]  }
  0x23   :  { %203 = dma.done.wait [#allocation4], 128  }
  0x24   :  { %204 = vsyncadd [#allocation4], 4294967168 }
  0x25   :  { %118 = vsyncpa [#allocation3], 1 }
  0x26   :  { %119 = vsyncpa [#allocation6], 1 }
  0x27   :  { %120 = vsyncpa [#allocation4], 1 }

</bundles_post_ra>
